<compile_context>
chip_gen: v5e
topology: v5e:2x2
jax: 0.10.0
libtpu: 0.0.40
codegen_flags: <defaults>
</compile_context>

<pallas_src>
import jax
import jax.numpy as jnp
from jax.experimental import pallas as pl
from jax.experimental.pallas import tpu as pltpu

LOGIT_CH = 14        # backbone segmentation channels (out_channels=14)
LOGIT_CH_PAD = 16    # padded to a sublane multiple of 8
HIDDEN_CH = 256      # backbone hidden feature channels
D = H = W = 6
SPATIAL = D * H * W        # 216 -> AvgPool3d(kernel=6, stride=1) pools everything
SPATIAL_PAD = 256          # padded to a lane multiple of 128


# ---------------------------------------------------------------------------
# Single fused kernel: channel-major logit projection + collapsed classifier
# ---------------------------------------------------------------------------
def _fused_unetr_fc_kernel(x_ref, wb_ref, head_ref, logit_ref, cls_ref):
    # x_ref:     (B, 1, 256)   spatial on the lane axis, zero-padded 216->256
    # wb_ref:    (2, 16, 1)    [0] = per-channel logit weight, [1] = bias
    # head_ref:  (2,)  SMEM    [a, c]: cls = sigmoid(a * sum(x) + c)
    # logit_ref: (B, 16, 256)  channel-major, lane-dense (unmasked vst)
    # cls_ref:   (B, 1)
    x = x_ref[...]                                     # (B, 1, 256)
    wl = wb_ref[0]                                     # (16, 1)
    bl = wb_ref[1]                                     # (16, 1)

    # K=1 pointwise conv == pure-VPU broadcast multiply-add (no MXU).
    logit_ref[...] = x * wl + bl                       # (B, 16, 256)

    # Collapsed classifier head: pooling commutes with the pointwise affine
    # hidden projection, so sigmoid(mean(hidden) @ w_fc + b_fc)
    # == sigmoid(a * sum_s(x) + c).  One XLU cross-lane reduce + EUP sigmoid.
    xsum = jnp.sum(x, axis=-1)                         # (B, 1)
    cls_ref[...] = jax.nn.sigmoid(
        xsum * head_ref[0] + head_ref[1]
    ).astype(cls_ref.dtype)


def fused_forward_call(x_pad, wb_pack, head_scalars):
    b = x_pad.shape[0]
    return pl.pallas_call(
        _fused_unetr_fc_kernel,
        out_shape=(
            jax.ShapeDtypeStruct((b, LOGIT_CH_PAD, SPATIAL_PAD), jnp.float32),
            jax.ShapeDtypeStruct((b, 1), jnp.float32),
        ),
        # Grid-free whole-problem-in-VMEM call: a few tens of KB total.
        # (At much larger batch, tile over B and mark it "parallel" so both
        #  v7x TensorCores are used; keep per-step blocks under scoped VMEM.)
        in_specs=[
            pl.BlockSpec(memory_space=pltpu.MemorySpace.VMEM),   # x
            pl.BlockSpec(memory_space=pltpu.MemorySpace.VMEM),   # packed w/b
            pl.BlockSpec(memory_space=pltpu.MemorySpace.SMEM),   # head scalars
        ],
        out_specs=(
            pl.BlockSpec(memory_space=pltpu.MemorySpace.VMEM),
            pl.BlockSpec(memory_space=pltpu.MemorySpace.VMEM),
        ),
    )(x_pad, wb_pack, head_scalars)


# ---------------------------------------------------------------------------
# Parameter init (deterministic, PyTorch-Linear-style uniform ±1/sqrt(fan_in))
# ---------------------------------------------------------------------------
def init_params(key):
    k1, k2, k3, k4, k5, k6 = jax.random.split(key, 6)

    def uniform(k, shape, fan_in):
        bound = 1.0 / jnp.sqrt(jnp.float32(fan_in))
        return jax.random.uniform(
            k, shape, dtype=jnp.float32, minval=-bound, maxval=bound
        )

    return {
        # stand-in backbone (1x1x1 convs), in_channels=1
        "w_logit": uniform(k1, (1, LOGIT_CH), 1),
        "b_logit": uniform(k2, (1, LOGIT_CH), 1),
        "w_hidden": uniform(k3, (1, HIDDEN_CH), 1),
        "b_hidden": uniform(k4, (1, HIDDEN_CH), 1),
        # classifier head: Linear(256, 1)
        "w_fc": uniform(k5, (HIDDEN_CH, 1), HIDDEN_CH),
        "b_fc": uniform(k6, (1, 1), HIDDEN_CH),
    }


def prepare_params(params, spatial=SPATIAL):
    """One-time weight preparation (hoisted out of the per-call forward)."""
    wl = jnp.zeros((LOGIT_CH_PAD, 1), jnp.float32).at[:LOGIT_CH, 0].set(
        params["w_logit"][0]
    )
    bl = jnp.zeros((LOGIT_CH_PAD, 1), jnp.float32).at[:LOGIT_CH, 0].set(
        params["b_logit"][0]
    )
    wb_pack = jnp.stack([wl, bl], axis=0)                       # (2, 16, 1)

    # Collapse mean-pool -> Linear(256,1) -> (+bias) through the pointwise
    # affine hidden projection into two scalars.
    a = (params["w_hidden"][0] @ params["w_fc"][:, 0]) / jnp.float32(spatial)
    c = params["b_hidden"][0] @ params["w_fc"][:, 0] + params["b_fc"][0, 0]
    head = jnp.stack([a, c]).astype(jnp.float32)                # (2,)
    return {"wb_pack": wb_pack, "head": head}


# ---------------------------------------------------------------------------
# Forward: mirrors BasicUNETRWithFC.forward
# ---------------------------------------------------------------------------
@jax.jit
def forward(prepared, x_ncdhw):
    b, c_in, d, h, w = x_ncdhw.shape
    s = d * h * w   # must be 6^3 so AvgPool3d(6,1) -> view(-1, 256) is valid

    # in_channels == 1: NCDHW -> (B, 1, S) is a pure reshape (no transpose);
    # zero-pad the spatial/lane axis 216 -> 256 (padding contributes 0 to the
    # classifier sum and is sliced off the logit output).
    x_pad = jnp.zeros((b, 1, SPATIAL_PAD), jnp.float32).at[:, :, :s].set(
        x_ncdhw.reshape(b, c_in, s)
    )

    logit_pad, classification_output = fused_forward_call(
        x_pad, prepared["wb_pack"], prepared["head"]
    )

    # Channel-major output: just slice off the padding and reshape.
    logit_map = logit_pad[:, :LOGIT_CH, :s].reshape(b, LOGIT_CH, d, h, w)
    return logit_map, classification_output               # (B, 1) float32


def _reference(params, x_ncdhw):
    # plain-JAX reference of the same forward for a correctness check
    b, _, d, h, w = x_ncdhw.shape
    x_flat = jnp.transpose(x_ncdhw, (0, 2, 3, 4, 1)).reshape(-1, 1)
    logit = (x_flat @ params["w_logit"] + params["b_logit"]).reshape(
        b, d, h, w, LOGIT_CH
    )
    logit = jnp.transpose(logit, (0, 4, 1, 2, 3))
    hidden = (x_flat @ params["w_hidden"] + params["b_hidden"]).reshape(
        b, d * h * w, HIDDEN_CH
    )
    pooled = jnp.mean(hidden, axis=1)
    cls = jax.nn.sigmoid(pooled @ params["w_fc"] + params["b_fc"])
    return logit, cls


if __name__ == "__main__":
    key = jax.random.PRNGKey(0)
    pkey, xkey = jax.random.split(key)
    params = init_params(pkey)
    prepared = prepare_params(params)   # one-time weight prep (not per call)

    # hidden spatial must be 6^3 so that AvgPool3d(kernel=6, stride=1)
    # -> (B, 256, 1, 1, 1) -> view(-1, 256)
    x = jax.random.normal(xkey, (2, 1, D, H, W), dtype=jnp.float32)

    logit_map, cls_out = forward(prepared, x)
    jax.block_until_ready((logit_map, cls_out))

    ref_logit, ref_cls = _reference(params, x)
    assert logit_map.shape == (2, LOGIT_CH, D, H, W)
    assert cls_out.shape == (2, 1) and cls_out.dtype == jnp.float32
    assert jnp.allclose(logit_map, ref_logit, atol=1e-5, rtol=1e-5)
    assert jnp.allclose(cls_out, ref_cls, atol=1e-5, rtol=1e-5)

    print("KERNEL_OK")
</pallas_src>

<mosaic_0001>
module attributes {stable_mosaic.version = 11 : i64} {
  func.func @_fused_unetr_fc_kernel(%arg0: memref<2x1x256xf32, #tpu.memory_space<vmem>>, %arg1: memref<2x16x1xf32, #tpu.memory_space<vmem>>, %arg2: memref<2xf32, #tpu.memory_space<smem>>, %arg3: memref<2x16x256xf32, #tpu.memory_space<vmem>>, %arg4: memref<2x1xf32, #tpu.memory_space<vmem>>) attributes {dimension_semantics = [], scalar_prefetch = 0 : i64, scratch_operands = 0 : i64, tpu.core_type = #tpu.core_type<tc>} {
    %c0 = arith.constant 0 : index
    %c0_0 = arith.constant 0 : index
    %c0_1 = arith.constant 0 : index
    %0 = vector.load %arg0[%c0, %c0_0, %c0_1] : memref<2x1x256xf32, #tpu.memory_space<vmem>>, vector<2x1x256xf32>
    %c0_2 = arith.constant 0 : index
    %c0_3 = arith.constant 0 : index
    %c0_4 = arith.constant 0 : index
    %1 = vector.load %arg1[%c0_2, %c0_3, %c0_4] : memref<2x16x1xf32, #tpu.memory_space<vmem>>, vector<1x16x1xf32>
    %2 = vector.shape_cast %1 : vector<1x16x1xf32> to vector<16x1xf32>
    %c1 = arith.constant 1 : index
    %c0_5 = arith.constant 0 : index
    %c0_6 = arith.constant 0 : index
    %3 = vector.load %arg1[%c1, %c0_5, %c0_6] : memref<2x16x1xf32, #tpu.memory_space<vmem>>, vector<1x16x1xf32>
    %4 = vector.shape_cast %3 : vector<1x16x1xf32> to vector<16x1xf32>
    %5 = vector.shape_cast %2 : vector<16x1xf32> to vector<1x16x1xf32>
    %6 = vector.broadcast %0 : vector<2x1x256xf32> to vector<2x16x256xf32>
    %7 = vector.broadcast %5 : vector<1x16x1xf32> to vector<2x16x256xf32>
    %8 = arith.mulf %6, %7 : vector<2x16x256xf32>
    %9 = vector.shape_cast %4 : vector<16x1xf32> to vector<1x16x1xf32>
    %10 = vector.broadcast %9 : vector<1x16x1xf32> to vector<2x16x256xf32>
    %11 = arith.addf %8, %10 : vector<2x16x256xf32>
    %c0_7 = arith.constant 0 : index
    %c0_8 = arith.constant 0 : index
    %c0_9 = arith.constant 0 : index
    %12 = vector.load %arg3[%c0_7, %c0_8, %c0_9] : memref<2x16x256xf32, #tpu.memory_space<vmem>>, vector<2x16x256xf32>
    tpu.vector_store %arg3[%c0_7, %c0_8, %c0_9], %11 {strides = array<i32>} : memref<2x16x256xf32, #tpu.memory_space<vmem>>, vector<2x16x256xf32>,
    %cst = arith.constant dense<0.000000e+00> : vector<2x1xf32>
    %13 = vector.multi_reduction <add>, %0, %cst [2] : vector<2x1x256xf32> to vector<2x1xf32>
    %c0_10 = arith.constant 0 : index
    %14 = memref.load %arg2[%c0_10] : memref<2xf32, #tpu.memory_space<smem>>
    %15 = vector.broadcast %14 : f32 to vector<2x1xf32>
    %16 = arith.mulf %13, %15 : vector<2x1xf32>
    %c1_11 = arith.constant 1 : index
    %17 = memref.load %arg2[%c1_11] : memref<2xf32, #tpu.memory_space<smem>>
    %18 = vector.broadcast %17 : f32 to vector<2x1xf32>
    %19 = arith.addf %16, %18 : vector<2x1xf32>
    %20 = arith.negf %19 : vector<2x1xf32>
    %21 = math.exp %20 : vector<2x1xf32>
    %cst_12 = arith.constant 1.000000e+00 : f32
    %22 = vector.broadcast %cst_12 : f32 to vector<2x1xf32>
    %23 = arith.addf %22, %21 : vector<2x1xf32>
    %24 = arith.divf %22, %23 : vector<2x1xf32>
    %c0_13 = arith.constant 0 : index
    %c0_14 = arith.constant 0 : index
    %25 = vector.load %arg4[%c0_13, %c0_14] : memref<2x1xf32, #tpu.memory_space<vmem>>, vector<2x1xf32>
    tpu.vector_store %arg4[%c0_13, %c0_14], %24 {strides = array<i32>} : memref<2x1xf32, #tpu.memory_space<vmem>>, vector<2x1xf32>,
    return
  }
}

</mosaic_0001>

<bundles_post_ra>
// kernel: forward.1
= control target key start
LH: loop header
LB: loop body
LE: loop exit
PB: predicated region body
PF: predicated region fallthrough
CT: control target
= control target key end

     0   :  { %10 = vsyncpa [#allocation3], 0  ;;  %s196_s18 = smov [#allocation2]   ;;  %s281_s0 = inlined_call_operand.vmem [shape: f32[2,1,256], index: 0, kind: input, shape index: {}]   ;;  %s282_s1 = inlined_call_operand.vmem [shape: f32[2,16,1], index: 1, kind: input, shape index: {}]   ;;  %s283_s2 = inlined_call_operand.vmem [shape: f32[2], index: 2, kind: input, shape index: {}]   ;;  %s284_s3 = inlined_call_operand.vmem [shape: f32[2,16,256], index: 3, kind: output, shape index: {0}]   ;;  %s285_s4 = inlined_call_operand.vmem [shape: f32[2,1], index: 4, kind: output, shape index: {1}]  }
   0x1   :  { %s20_s17 = sshll.u32 %s283_s2, 4  ;;  %s21_s17 = int_to_ptr.vmem [resolvable:$true] %s20_s17 }
   0x2   :  { %23 = dma.vmem_to_smem %s21_s17, 16, %s196_s18, [#allocation3]  }
   0x3   :  { %194 = dma.done.wait [#allocation3], 16  }
   0x4   :  { %195 = vsyncadd [#allocation3], 4294967280 }
   0x5   :  { %28 = sfence }
   0x6   :  { %v30_v0 = vld [vmem:[%s281_s0 + $0x2] sm:$0x3]  ;;  %vm90_vm0 = vcmask 1040384   ;;  %v29_v1 = vld [vmem:[%s281_s0] sm:$0x3]  ;;  %v197_v4 = vmov 0  }
   0x7   :  { %v40_v2 = vperm.slane %v30_v0, 0  ;;  %v41_v3 = vperm.slane %v30_v0, 1  ;;  %171 = vset.pattern.permute.xlu1 %v197_v4  ;;  %v31_v5 = vld [vmem:[%s282_s1] sm:$0xff]  ;;  %172 = vset.pattern.permute.xlu2 %v197_v4  ;;  %v164_v6 = vld [vmem:[%s282_s1 + $0x10] sm:$0xff]  ;;  %v38_v9 = vperm.slane %v29_v1, 0  ;;  %v39_v10 = vperm.slane %v29_v1, 1 }
   0x8   :  { %48 = vperm.xlu1 %171, %v31_v5   ;;  %173 = vset.pattern.permute.xlu0 %v197_v4  ;;  %v32_v14 = vld [vmem:[%s282_s1 + $0x8] sm:$0xff]  ;;  %v165_v15 = vld [vmem:[%s282_s1 + $0x18] sm:$0xff]  ;;  %s248_s29 = sld [smem:[#allocation2]]  ;;  %vm150_vm7 = vcmask 1041409   ;;  %vm153_vm9 = vcmask 1024  }
   0x9   :  { %v96_v7 = vsel %vm90_vm0, %v40_v2, 0.0  ;;  %v97_v8 = vsel %vm90_vm0, %v41_v3, 0.0  ;;  %66 = vperm.xlu2 %172, %v164_v6   ;;  %v91_v12 = vsel %vm90_vm0, %v38_v9, 0.0  ;;  %v92_v13 = vsel %vm90_vm0, %v39_v10, 0.0  ;;  %s250_s30 = sld [smem:[#allocation2 + $0x1]] }
   0xa   :  { %v98_v11 = vadd.f32 %v97_v8, %v96_v7  ;;  %v93_v16 = vadd.f32 %v92_v13, %v91_v12 }
   0xc   :  { %99 = vadd.xlane.f32.xlu0 %v98_v11 }
   0xe   :  { %v102_v19 = vstv %s248_s29 }
   0xf   :  { %v106_v24 = vstv %s250_s30 }
  0x10   :  { %53 = vperm.xlu1 %171, %v32_v14  }
  0x11   :  { %71 = vperm.xlu2 %172, %v165_v15  }
  0x14   :  { %94 = vadd.xlane.f32.xlu0 %v93_v16 }
  0x63   :  { %v67_v17 = vpop.permute.xlu2 %66 }
  0x6b   :  { %v72_v33 = vpop.permute.xlu2 %71 }
  0x7a   :  { %v49_v18 = vpop.permute.xlu1 %48 }
  0x7b   :  { %v56_v20 = vmul.f32 %v49_v18, %v38_v9  ;;  %v57_v21 = vmul.f32 %v49_v18, %v39_v10  ;;  %v60_v22 = vmul.f32 %v49_v18, %v40_v2  ;;  %v61_v23 = vmul.f32 %v49_v18, %v41_v3 }
  0x7d   :  { %v74_v26 = vadd.f32 %v67_v17, %v56_v20  ;;  %v75_v27 = vadd.f32 %v67_v17, %v57_v21  ;;  %v78_v28 = vadd.f32 %v67_v17, %v60_v22  ;;  %v79_v30 = vadd.f32 %v67_v17, %v61_v23 }
  0x7f   :  { %v100_v25 = vpop.xlane.xlu0 %99  ;;  %82 = vst [vmem:[%s284_s3] sm:$0xff] %v74_v26 }
  0x80   :  { %v104_v29 = vmul.f32 %v102_v19, %v100_v25  ;;  %83 = vst [vmem:[%s284_s3 + $0x8] sm:$0xff] %v75_v27 }
  0x81   :  { %86 = vst [vmem:[%s284_s3 + $0x20] sm:$0xff] %v78_v28 }
  0x82   :  { %v108_v31 = vadd.f32 %v106_v24, %v104_v29  ;;  %v54_v32 = vpop.permute.xlu1 %53  ;;  %87 = vst [vmem:[%s284_s3 + $0x28] sm:$0xff] %v79_v30 }
  0x83   :  { %v58_v34 = vmul.f32 %v54_v32, %v38_v9  ;;  %v59_v35 = vmul.f32 %v54_v32, %v39_v10  ;;  %v62_v36 = vmul.f32 %v54_v32, %v40_v2  ;;  %v63_v37 = vmul.f32 %v54_v32, %v41_v3 }
  0x84   :  { %v168_v38 = vmul.f32 -1.442695, %v108_v31 }
  0x85   :  { %v76_v39 = vadd.f32 %v72_v33, %v58_v34  ;;  %v77_v40 = vadd.f32 %v72_v33, %v59_v35  ;;  %v80_v41 = vadd.f32 %v72_v33, %v62_v36  ;;  %v81_v42 = vadd.f32 %v72_v33, %v63_v37 }
  0x86   :  { %174 = vpow2.f32 %v168_v38 }
  0x87   :  { %v95_v43 = vpop.xlane.xlu0 %94  ;;  %84 = vst [vmem:[%s284_s3 + $0x10] sm:$0xff] %v76_v39 }
  0x88   :  { %v103_v44 = vmul.f32 %v102_v19, %v95_v43  ;;  %85 = vst [vmem:[%s284_s3 + $0x18] sm:$0xff] %v77_v40 }
  0x89   :  { %88 = vst [vmem:[%s284_s3 + $0x30] sm:$0xff] %v80_v41 }
  0x8a   :  { %v107_v45 = vadd.f32 %v106_v24, %v103_v44  ;;  %89 = vst [vmem:[%s284_s3 + $0x38] sm:$0xff] %v81_v42 }
  0x8c   :  { %v175_v46 = vpop.eup %174  ;;  %v167_v47 = vmul.f32 -1.442695, %v107_v45 }
  0x8d   :  { %v116_v48 = vadd.f32 1.0, %v175_v46 }
  0x8e   :  { %176 = vpow2.f32 %v167_v47 }
  0x8f   :  { %178 = vrcp.f32 %v116_v48  ;;  %v143_v57 = vand.u32 2147483648, %v116_v48  ;;  %vm137_vm2 = vweird.f32 %v116_v48  ;;  %v141_v58 = vand.u32 2147483647, %v116_v48 }
  0x91   :  { %v144_v62 = vor.u32 1.1754944e-38, %v143_v57  ;;  %vm142_vm4 = vcmp.eq.f32.partialorder %v141_v58, 8.507059e+37 }
  0x94   :  { %v177_v49 = vpop.eup %176 }
  0x95   :  { %v179_v50 = vpop.eup %178  ;;  %v115_v51 = vadd.f32 1.0, %v177_v49 }
  0x96   :  { %v133_v52 = vmul.f32 %v179_v50, %v116_v48  ;;  %vm138_vm1 = vweird.f32 %v179_v50 }
  0x97   :  { %180 = vrcp.f32 %v115_v51  ;;  %vm139_vm3 = vmor %vm137_vm2, %vm138_vm1  ;;  %v128_v63 = vand.u32 2147483648, %v115_v51  ;;  %v126_v1 = vand.u32 2147483647, %v115_v51  ;;  %vm122_vm6 = vweird.f32 %v115_v51 }
  0x98   :  { %v134_v53 = vsub.f32 1.0, %v133_v52 }
  0x99   :  { %v129_v4 = vor.u32 1.1754944e-38, %v128_v63  ;;  %vm127_vm10 = vcmp.eq.f32.partialorder %v126_v1, 8.507059e+37 }
  0x9a   :  { %v135_v54 = vmul.f32 %v179_v50, %v134_v53 }
  0x9c   :  { %v136_v55 = vadd.f32 %v179_v50, %v135_v54 }
  0x9d   :  { %v181_v56 = vpop.eup %180 }
  0x9e   :  { %v118_v59 = vmul.f32 %v181_v56, %v115_v51  ;;  %v140_v60 = vsel %vm139_vm3, %v179_v50, %v136_v55  ;;  %vm123_vm5 = vweird.f32 %v181_v56 }
  0x9f   :  { %v145_v2 = vsel %vm142_vm4, %v144_v62, %v140_v60  ;;  %vm124_vm8 = vmor %vm122_vm6, %vm123_vm5 }
  0xa0   :  { %v119_v61 = vsub.f32 1.0, %v118_v59  ;;  %v149_v5 = vrot.slane %v145_v2, 7 }
  0xa2   :  { %v120_v0 = vmul.f32 %v181_v56, %v119_v61 }
  0xa4   :  { %v121_v3 = vadd.f32 %v181_v56, %v120_v0 }
  0xa6   :  { %v125_v6 = vsel %vm124_vm8, %v181_v56, %v121_v3 }
  0xa7   :  { %v130_v7 = vsel %vm127_vm10, %v129_v4, %v125_v6 }
  0xa8   :  { %v151_v8 = vsel %vm150_vm7, %v149_v5, %v130_v7 }
  0xa9   :  { %154 = vst.msk [vmem:[%s285_s4] sm:$0x3] %vm153_vm9, %v151_v8 }
  0xaa   :  { %163 = vsyncpa [#allocation3], 1 }

</bundles_post_ra>
